<compile_context>
chip_gen: v7x
topology: tpu7x:2x2x1
jax: 0.10.0
libtpu: 0.0.40
codegen_flags: <defaults>
</compile_context>

<pallas_src>
import functools
import math

import jax
import jax.numpy as jnp
import numpy as np
from jax.experimental import pallas as pl
from jax.experimental.pallas import tpu as pltpu

_LANES = 128
_CLASS_FREQS = np.array(
    [1 / 1113, 1 / 6705, 1 / 514, 1 / 327, 1 / 1099, 1 / 115, 1 / 142],
    dtype=np.float64,
)


def default_class_weights(num_classes: int = 7) -> np.ndarray:
    """Length-C normalized class weights, exactly as the PyTorch __init__."""
    assert num_classes == _CLASS_FREQS.shape[0]
    return (_CLASS_FREQS / _CLASS_FREQS.sum()).astype(np.float32)


def _wbce_kernel(preds_ref, tgt_ref, wpat_ref, out_ref,
                 acc1_ref, acc2_ref, acc3_ref, *, tile_lanes, valid_cols):
    c = pl.program_id(0)            # core-split index ("parallel" axis)
    j = pl.program_id(1)            # reduction step within this split
    spc = pl.num_programs(1)

    @pl.when(j == 0)
    def _init():
        acc1_ref[...] = jnp.zeros_like(acc1_ref)
        acc2_ref[...] = jnp.zeros_like(acc2_ref)
        acc3_ref[...] = jnp.zeros_like(acc3_ref)

    p = preds_ref[...].astype(jnp.float32)     # (S, tile_lanes) probabilities
    t = tgt_ref[...].astype(jnp.float32)       # raw {0,1} targets (bf16/int8/f32)
    w = wpat_ref[...]                          # per-element class weight, f32

    # Global flat-column index of each lane in this (UNclamped) logical block.
    # valid_cols / tile_lanes are trace-time constants, so no scalar prefetch
    # is needed; out-of-range lanes (partial last block or duplicated blocks on
    # the second core split) are masked out.
    blk = c * spc + j
    lane = jax.lax.broadcasted_iota(jnp.int32, p.shape, 1)
    valid = (blk * tile_lanes + lane) < valid_cols

    # Mask BEFORE the log: invalid lanes may hold garbage preds, so force their
    # log argument to 1.0 (-> log == 0) and their target to 0.
    t = jnp.where(valid, t, 0.0)
    pos = t > 0.0                              # target == 1 (binary labels)
    logv = jnp.log(jnp.where(pos, p, jnp.where(valid, 1.0 - p, 1.0)))

    wt = t * w                                 # target * class_weight (0 where target==0)

    # The select on acc1 is kept on purpose: if preds saturate to exactly 1.0,
    # logv = log(1-p) = -inf on a negative lane and wt*logv = 0*(-inf) = NaN
    # would poison the sum; one vselect/vreg rides idle VALU slots.
    acc1_ref[...] += jnp.where(pos, wt * logv, 0.0)   # sum(t * w * log p)
    acc2_ref[...] += jnp.where(pos, 0.0, logv)        # sum((1-t) * log(1-p))
    acc3_ref[...] += wt                               # sum(t * w)

    @pl.when(j == spc - 1)
    def _finalize():
        # Single cross-lane / cross-sublane reduce per accumulator, once.
        s1 = jnp.sum(acc1_ref[...])
        s2 = jnp.sum(acc2_ref[...])
        tw = jnp.sum(acc3_ref[...])
        col = jax.lax.broadcasted_iota(jnp.int32, out_ref.shape, 1)
        vals = jnp.where(col == 0, s1, 0.0)
        vals = jnp.where(col == 1, s2, vals)
        vals = jnp.where(col == 2, tw, vals)
        out_ref[...] = vals                    # per-split partials in lanes 0..2


def weighted_bce_loss(preds, target, class_weights=None, *,
                      max_tile_lanes: int = 32 * 896, core_splits: int = 2):
    """Pallas TPU implementation of weightedBCELoss.forward(preds, target).

    preds:  (B, C) probabilities in (0, 1), any float dtype.
    target: (B, C) multi-hot labels in {0, 1}; pass bf16/int8 to halve/quarter
            the target HBM stream (the kernel upcasts in-register).
    class_weights: concrete length-C weights (numpy / list); defaults to the
            normalized inverse class frequencies from the PyTorch module.
    """
    B, C = preds.shape
    assert target.shape == (B, C)
    if class_weights is None:
        class_weights = default_class_weights(C)
    w_vec = np.asarray(class_weights, dtype=np.float32).reshape(C)

    N = B * C
    # Lane-dense, ZERO-COPY layout: row-major (B, C) -> (S, N // S) is a pure
    # bitcast (no pad, no elementwise pass over the inputs in the wrapper).
    S = next(s for s in (8, 4, 2, 1) if N % s == 0)   # S=8 whenever 8 | B
    cols = N // S

    if cols <= max_tile_lanes:
        tile_lanes = cols                      # single block: full lane dim allowed
    else:
        base = (128 * C) // math.gcd(128, C)   # multiple of 128 and of C, so one
        tile_lanes = base * max(1, max_tile_lanes // base)  # weight pattern fits all tiles
    n_blocks = -(-cols // tile_lanes)
    steps_per_split = -(-n_blocks // core_splits)

    # Per-element class-weight pattern for one (S, tile_lanes) block.  Element
    # (r, c) of the (S, cols) view is flat index r*cols + c, whose class is
    # (r*cols + c) % C.  Since every block start is a multiple of C (or there
    # is only one block), a single pattern block is valid at every grid step;
    # with a constant index_map it is DMA'd once and stays VMEM-resident.
    idx = (np.arange(S)[:, None] * cols + np.arange(tile_lanes)[None, :]) % C
    w_pattern = jnp.asarray(w_vec[idx])        # (S, tile_lanes) f32, trace-time constant

    preds2d = preds.reshape(S, cols)
    target2d = target.reshape(S, cols)

    kernel = functools.partial(_wbce_kernel, tile_lanes=tile_lanes, valid_cols=cols)

    def stream_map(c, j):
        # Clamp so any extra step of the last core split re-reads a valid block;
        # its contribution is zeroed by the in-kernel mask (unclamped index).
        return (0, jnp.minimum(c * steps_per_split + j, n_blocks - 1))

    out = pl.pallas_call(
        kernel,
        out_shape=jax.ShapeDtypeStruct((8 * core_splits, _LANES), jnp.float32),
        grid_spec=pltpu.PrefetchScalarGridSpec(
            num_scalar_prefetch=0,
            grid=(core_splits, steps_per_split),
            in_specs=[
                pl.BlockSpec((S, tile_lanes), stream_map),           # preds
                pl.BlockSpec((S, tile_lanes), stream_map),           # raw target
                pl.BlockSpec((S, tile_lanes), lambda c, j: (0, 0)),  # resident weights
            ],
            out_specs=pl.BlockSpec((8, _LANES), lambda c, j: (c, 0)),
            scratch_shapes=[
                pltpu.VMEM((S, tile_lanes), jnp.float32),   # acc1: t*w*log p
                pltpu.VMEM((S, tile_lanes), jnp.float32),   # acc2: (1-t)*log(1-p)
                pltpu.VMEM((S, tile_lanes), jnp.float32),   # acc3: t*w
            ],
        ),
        compiler_params=pltpu.CompilerParams(
            dimension_semantics=("parallel", "arbitrary"),
            vmem_limit_bytes=32 * 1024 * 1024,
        ),
    )(preds2d, target2d, w_pattern)

    # Tiny scalar epilogue in plain JAX: combine per-split partials and apply
    # the normalization exactly as the PyTorch forward does.
    parts = out[::8, :3]                       # (core_splits, 3): [s1, s2, sum_w]
    s1 = parts[:, 0].sum()
    s2 = parts[:, 1].sum()
    sum_w = parts[:, 2].sum()
    # loss = -( (B / sum_w) * s1 + 0.1667 * s2 ) / (B * C)
    # 0.1667 (not 1/6) is kept verbatim from the PyTorch reference.
    # sum_w == 0 (all-negative batch) yields NaN, same as the reference.
    return -(jnp.float32(B) * (s1 / sum_w) + jnp.float32(0.1667) * s2) / jnp.float32(B * C)


if __name__ == "__main__":
    batch_size, num_classes = 16, 7

    key = jax.random.PRNGKey(0)
    k1, k2 = jax.random.split(key)

    # preds must lie in (0, 1); build via sigmoid of random logits.
    logits = jax.random.normal(k1, (batch_size, num_classes), dtype=jnp.float32)
    preds = jax.nn.sigmoid(logits)
    # Multi-hot {0,1} labels; bf16 is exact for {0,1} and halves the target
    # stream's HBM traffic (the kernel upcasts in-register).
    target = (jax.random.uniform(k2, (batch_size, num_classes)) > 0.5).astype(jnp.bfloat16)

    loss = jax.jit(weighted_bce_loss)(preds, target)
    jax.block_until_ready(loss)

    # Pure-JAX reference replicating the PyTorch forward exactly.
    t_f = target.astype(jnp.float32)
    w_row = jnp.asarray(default_class_weights(num_classes)).reshape(1, num_classes)
    w_full = jnp.tile(w_row, (batch_size, 1))
    w = t_f * w_full
    wn = w / jnp.sum(w) * batch_size
    bce = wn * jnp.log(preds) + 0.1667 * (1.0 - t_f) * jnp.log(1.0 - preds)
    ref = -jnp.sum(bce) / (batch_size * num_classes)

    assert jnp.allclose(loss, ref, rtol=2e-5, atol=1e-6), (loss, ref)
    print("KERNEL_OK")
</pallas_src>

<mosaic_0001>
module attributes {stable_mosaic.version = 11 : i64} {
  func.func @_wbce_kernel(%arg0: i32, %arg1: i32, %arg2: memref<8x14xf32, #tpu.memory_space<vmem>>, %arg3: memref<8x14xbf16, #tpu.memory_space<vmem>>, %arg4: memref<8x14xf32, #tpu.memory_space<vmem>>, %arg5: memref<8x128xf32, #tpu.memory_space<vmem>>, %arg6: memref<8x14xf32, #tpu.memory_space<vmem>>, %arg7: memref<8x14xf32, #tpu.memory_space<vmem>>, %arg8: memref<8x14xf32, #tpu.memory_space<vmem>>) attributes {dimension_semantics = [#tpu.dimension_semantics<parallel>, #tpu.dimension_semantics<arbitrary>], iteration_bounds = array<i64: 2, 1>, scalar_prefetch = 0 : i64, scratch_operands = 3 : i64, tpu.core_type = #tpu.core_type<tc>, window_params = [{transform_indices = @transform_0, window_bounds = array<i64: 8, 14>}, {transform_indices = @transform_1, window_bounds = array<i64: 8, 14>}, {pipeline_mode = #tpu.pipeline_mode<synchronous>, transform_indices = @transform_2, window_bounds = array<i64: 8, 14>}, {transform_indices = @transform_3, window_bounds = array<i64: 8, 128>}]} {
    %c0_i32 = arith.constant 0 : i32
    %0 = arith.cmpi eq, %arg1, %c0_i32 : i32
    %1 = arith.extui %0 : i1 to i32
    %c0_i32_0 = arith.constant 0 : i32
    %2 = arith.cmpi ne, %1, %c0_i32_0 : i32
    scf.if %2 {
      %cst_26 = arith.constant 0.000000e+00 : f32
      %43 = vector.broadcast %cst_26 : f32 to vector<8x14xf32>
      %c0_27 = arith.constant 0 : index
      %c0_28 = arith.constant 0 : index
      %44 = vector.load %arg6[%c0_27, %c0_28] : memref<8x14xf32, #tpu.memory_space<vmem>>, vector<8x14xf32>
      tpu.vector_store %arg6[%c0_27, %c0_28], %43 {strides = array<i32>} : memref<8x14xf32, #tpu.memory_space<vmem>>, vector<8x14xf32>,
      %cst_29 = arith.constant 0.000000e+00 : f32
      %45 = vector.broadcast %cst_29 : f32 to vector<8x14xf32>
      %c0_30 = arith.constant 0 : index
      %c0_31 = arith.constant 0 : index
      %46 = vector.load %arg7[%c0_30, %c0_31] : memref<8x14xf32, #tpu.memory_space<vmem>>, vector<8x14xf32>
      tpu.vector_store %arg7[%c0_30, %c0_31], %45 {strides = array<i32>} : memref<8x14xf32, #tpu.memory_space<vmem>>, vector<8x14xf32>,
      %cst_32 = arith.constant 0.000000e+00 : f32
      %47 = vector.broadcast %cst_32 : f32 to vector<8x14xf32>
      %c0_33 = arith.constant 0 : index
      %c0_34 = arith.constant 0 : index
      %48 = vector.load %arg8[%c0_33, %c0_34] : memref<8x14xf32, #tpu.memory_space<vmem>>, vector<8x14xf32>
      tpu.vector_store %arg8[%c0_33, %c0_34], %47 {strides = array<i32>} : memref<8x14xf32, #tpu.memory_space<vmem>>, vector<8x14xf32>,
    } else {
    }
    %c0 = arith.constant 0 : index
    %c0_1 = arith.constant 0 : index
    %3 = vector.load %arg2[%c0, %c0_1] : memref<8x14xf32, #tpu.memory_space<vmem>>, vector<8x14xf32>
    %c0_2 = arith.constant 0 : index
    %c0_3 = arith.constant 0 : index
    %4 = vector.load %arg3[%c0_2, %c0_3] : memref<8x14xbf16, #tpu.memory_space<vmem>>, vector<8x14xbf16>
    %5 = arith.extf %4 : vector<8x14xbf16> to vector<8x14xf32>
    %c0_4 = arith.constant 0 : index
    %c0_5 = arith.constant 0 : index
    %6 = vector.load %arg4[%c0_4, %c0_5] : memref<8x14xf32, #tpu.memory_space<vmem>>, vector<8x14xf32>
    %c1_i32 = arith.constant 1 : i32
    %7 = arith.muli %arg0, %c1_i32 : i32
    %8 = arith.addi %7, %arg1 : i32
    %9 = tpu.iota {dimensions = array<i32: 1>} : vector<8x14xi32>
    %c14_i32 = arith.constant 14 : i32
    %10 = arith.muli %8, %c14_i32 : i32
    %11 = vector.broadcast %10 : i32 to vector<8x14xi32>
    %12 = arith.addi %11, %9 : vector<8x14xi32>
    %c14_i32_6 = arith.constant 14 : i32
    %13 = vector.broadcast %c14_i32_6 : i32 to vector<8x14xi32>
    %14 = arith.cmpi slt, %12, %13 : vector<8x14xi32>
    %cst = arith.constant 0.000000e+00 : f32
    %15 = vector.broadcast %cst : f32 to vector<8x14xf32>
    %16 = arith.select %14, %5, %15 : vector<8x14xi1>, vector<8x14xf32>
    %cst_7 = arith.constant 0.000000e+00 : f32
    %17 = vector.broadcast %cst_7 : f32 to vector<8x14xf32>
    %18 = arith.cmpf ogt, %16, %17 : vector<8x14xf32>
    %cst_8 = arith.constant 1.000000e+00 : f32
    %19 = vector.broadcast %cst_8 : f32 to vector<8x14xf32>
    %20 = arith.subf %19, %3 : vector<8x14xf32>
    %cst_9 = arith.constant 1.000000e+00 : f32
    %21 = vector.broadcast %cst_9 : f32 to vector<8x14xf32>
    %22 = arith.select %14, %20, %21 : vector<8x14xi1>, vector<8x14xf32>
    %23 = arith.select %18, %3, %22 : vector<8x14xi1>, vector<8x14xf32>
    %24 = math.log %23 : vector<8x14xf32>
    %25 = arith.mulf %16, %6 : vector<8x14xf32>
    %c0_10 = arith.constant 0 : index
    %c0_11 = arith.constant 0 : index
    %26 = vector.load %arg6[%c0_10, %c0_11] : memref<8x14xf32, #tpu.memory_space<vmem>>, vector<8x14xf32>
    %27 = arith.mulf %25, %24 : vector<8x14xf32>
    %cst_12 = arith.constant 0.000000e+00 : f32
    %28 = vector.broadcast %cst_12 : f32 to vector<8x14xf32>
    %29 = arith.select %18, %27, %28 : vector<8x14xi1>, vector<8x14xf32>
    %30 = arith.addf %26, %29 : vector<8x14xf32>
    %c0_13 = arith.constant 0 : index
    %c0_14 = arith.constant 0 : index
    %31 = vector.load %arg6[%c0_13, %c0_14] : memref<8x14xf32, #tpu.memory_space<vmem>>, vector<8x14xf32>
    tpu.vector_store %arg6[%c0_13, %c0_14], %30 {strides = array<i32>} : memref<8x14xf32, #tpu.memory_space<vmem>>, vector<8x14xf32>,
    %c0_15 = arith.constant 0 : index
    %c0_16 = arith.constant 0 : index
    %32 = vector.load %arg7[%c0_15, %c0_16] : memref<8x14xf32, #tpu.memory_space<vmem>>, vector<8x14xf32>
    %cst_17 = arith.constant 0.000000e+00 : f32
    %33 = vector.broadcast %cst_17 : f32 to vector<8x14xf32>
    %34 = arith.select %18, %33, %24 : vector<8x14xi1>, vector<8x14xf32>
    %35 = arith.addf %32, %34 : vector<8x14xf32>
    %c0_18 = arith.constant 0 : index
    %c0_19 = arith.constant 0 : index
    %36 = vector.load %arg7[%c0_18, %c0_19] : memref<8x14xf32, #tpu.memory_space<vmem>>, vector<8x14xf32>
    tpu.vector_store %arg7[%c0_18, %c0_19], %35 {strides = array<i32>} : memref<8x14xf32, #tpu.memory_space<vmem>>, vector<8x14xf32>,
    %c0_20 = arith.constant 0 : index
    %c0_21 = arith.constant 0 : index
    %37 = vector.load %arg8[%c0_20, %c0_21] : memref<8x14xf32, #tpu.memory_space<vmem>>, vector<8x14xf32>
    %38 = arith.addf %37, %25 : vector<8x14xf32>
    %c0_22 = arith.constant 0 : index
    %c0_23 = arith.constant 0 : index
    %39 = vector.load %arg8[%c0_22, %c0_23] : memref<8x14xf32, #tpu.memory_space<vmem>>, vector<8x14xf32>
    tpu.vector_store %arg8[%c0_22, %c0_23], %38 {strides = array<i32>} : memref<8x14xf32, #tpu.memory_space<vmem>>, vector<8x14xf32>,
    %c0_i32_24 = arith.constant 0 : i32
    %40 = arith.cmpi eq, %arg1, %c0_i32_24 : i32
    %41 = arith.extui %40 : i1 to i32
    %c0_i32_25 = arith.constant 0 : i32
    %42 = arith.cmpi ne, %41, %c0_i32_25 : i32
    scf.if %42 {
      %c0_26 = arith.constant 0 : index
      %c0_27 = arith.constant 0 : index
      %43 = vector.load %arg6[%c0_26, %c0_27] : memref<8x14xf32, #tpu.memory_space<vmem>>, vector<8x14xf32>
      %44 = vector.shape_cast %43 : vector<8x14xf32> to vector<1x8x14xf32>
      %cst_28 = arith.constant dense<0.000000e+00> : vector<1xf32>
      %45 = vector.multi_reduction <add>, %44, %cst_28 [1, 2] : vector<1x8x14xf32> to vector<1xf32>
      %46 = vector.shape_cast %45 : vector<1xf32> to vector<1x1x1xf32>
      %47 = vector.extract %46[0, 0, 0] : f32 from vector<1x1x1xf32>
      %c0_29 = arith.constant 0 : index
      %c0_30 = arith.constant 0 : index
      %48 = vector.load %arg7[%c0_29, %c0_30] : memref<8x14xf32, #tpu.memory_space<vmem>>, vector<8x14xf32>
      %49 = vector.shape_cast %48 : vector<8x14xf32> to vector<1x8x14xf32>
      %cst_31 = arith.constant dense<0.000000e+00> : vector<1xf32>
      %50 = vector.multi_reduction <add>, %49, %cst_31 [1, 2] : vector<1x8x14xf32> to vector<1xf32>
      %51 = vector.shape_cast %50 : vector<1xf32> to vector<1x1x1xf32>
      %52 = vector.extract %51[0, 0, 0] : f32 from vector<1x1x1xf32>
      %c0_32 = arith.constant 0 : index
      %c0_33 = arith.constant 0 : index
      %53 = vector.load %arg8[%c0_32, %c0_33] : memref<8x14xf32, #tpu.memory_space<vmem>>, vector<8x14xf32>
      %54 = vector.shape_cast %53 : vector<8x14xf32> to vector<1x8x14xf32>
      %cst_34 = arith.constant dense<0.000000e+00> : vector<1xf32>
      %55 = vector.multi_reduction <add>, %54, %cst_34 [1, 2] : vector<1x8x14xf32> to vector<1xf32>
      %56 = vector.shape_cast %55 : vector<1xf32> to vector<1x1x1xf32>
      %57 = vector.extract %56[0, 0, 0] : f32 from vector<1x1x1xf32>
      %58 = tpu.iota {dimensions = array<i32: 1>} : vector<8x128xi32>
      %c0_i32_35 = arith.constant 0 : i32
      %59 = vector.broadcast %c0_i32_35 : i32 to vector<8x128xi32>
      %60 = arith.cmpi eq, %58, %59 : vector<8x128xi32>
      %cst_36 = arith.constant 0.000000e+00 : f32
      %61 = vector.broadcast %47 : f32 to vector<8x128xf32>
      %62 = vector.broadcast %cst_36 : f32 to vector<8x128xf32>
      %63 = arith.select %60, %61, %62 : vector<8x128xi1>, vector<8x128xf32>
      %c1_i32_37 = arith.constant 1 : i32
      %64 = vector.broadcast %c1_i32_37 : i32 to vector<8x128xi32>
      %65 = arith.cmpi eq, %58, %64 : vector<8x128xi32>
      %66 = vector.broadcast %52 : f32 to vector<8x128xf32>
      %67 = arith.select %65, %66, %63 : vector<8x128xi1>, vector<8x128xf32>
      %c2_i32 = arith.constant 2 : i32
      %68 = vector.broadcast %c2_i32 : i32 to vector<8x128xi32>
      %69 = arith.cmpi eq, %58, %68 : vector<8x128xi32>
      %70 = vector.broadcast %57 : f32 to vector<8x128xf32>
      %71 = arith.select %69, %70, %67 : vector<8x128xi1>, vector<8x128xf32>
      %c0_38 = arith.constant 0 : index
      %c0_39 = arith.constant 0 : index
      %72 = vector.load %arg5[%c0_38, %c0_39] : memref<8x128xf32, #tpu.memory_space<vmem>>, vector<8x128xf32>
      tpu.vector_store %arg5[%c0_38, %c0_39], %71 {strides = array<i32>} : memref<8x128xf32, #tpu.memory_space<vmem>>, vector<8x128xf32>,
    } else {
    }
    return
  }
  func.func @transform_0(%arg0: i32, %arg1: i32) -> (i32, i32) {
    %c1_i32 = arith.constant 1 : i32
    %0 = arith.muli %arg0, %c1_i32 : i32
    %1 = arith.addi %0, %arg1 : i32
    %c0_i32 = arith.constant 0 : i32
    %2 = arith.minsi %1, %c0_i32 : i32
    %c0_i32_0 = arith.constant 0 : i32
    %c0_i32_1 = arith.constant 0 : i32
    return %c0_i32_0, %2 : i32, i32
  }
  func.func @transform_1(%arg0: i32, %arg1: i32) -> (i32, i32) {
    %c1_i32 = arith.constant 1 : i32
    %0 = arith.muli %arg0, %c1_i32 : i32
    %1 = arith.addi %0, %arg1 : i32
    %c0_i32 = arith.constant 0 : i32
    %2 = arith.minsi %1, %c0_i32 : i32
    %c0_i32_0 = arith.constant 0 : i32
    %c0_i32_1 = arith.constant 0 : i32
    return %c0_i32_0, %2 : i32, i32
  }
  func.func @transform_2(%arg0: i32, %arg1: i32) -> (i32, i32) {
    %c0_i32 = arith.constant 0 : i32
    %c0_i32_0 = arith.constant 0 : i32
    %c0_i32_1 = arith.constant 0 : i32
    return %c0_i32, %c0_i32_0 : i32, i32
  }
  func.func @transform_3(%arg0: i32, %arg1: i32) -> (i32, i32) {
    %c0_i32 = arith.constant 0 : i32
    %c0_i32_0 = arith.constant 0 : i32
    return %arg0, %c0_i32 : i32, i32
  }
}

</mosaic_0001>

<bundles_post_ra>
// kernel: weighted_bce_loss.1
= control target key start
LH: loop header
LB: loop body
LE: loop exit
PB: predicated region body
PF: predicated region fallthrough
CT: control target
= control target key end

     0   :  { %s490_s12 = smov 0   ;;  %s492_s13 = smov 0   ;;  %s551_s0 = inlined_call_operand.vmem [shape: f32[8,14], index: 0, kind: input, shape index: {}]   ;;  %s552_s1 = inlined_call_operand.vmem [shape: bf16[8,14], index: 1, kind: input, shape index: {}]   ;;  %s553_s2 = inlined_call_operand.vmem [shape: f32[8,14], index: 2, kind: input, shape index: {}]   ;;  %s554_s3 = inlined_call_operand.vmem [shape: f32[16,128], index: 3, kind: output, shape index: {}]  }
   0x1   :  { %s494_s14 = smov 0  }
   0x2 LB: > { %s25_s15 = sadd.s32 1, %s463_s13  ;;  %p400_p0 = scmp.ge.s32.totalorder %s467_s14, 1  ;;  %s467_s14 = sphi %s494_s14, %s13_s14   ;;  %s463_s13 = sphi %s492_s13, %s556_s13   ;;  %s459_s12 = sphi %s490_s12, %s555_s12  }
   0x3   : > { %p27_p1 = scmp.ge.s32.totalorder %s25_s15, 2  ;;  %p181_p2 = scmp.lt.s32.totalorder %s467_s14, 3 }
   0x5   : > { %s558_s15 = smov (%p27_p1, %s25_s15), 0  ;;  %p182_p3 = pnand %p400_p0, %p181_p2 }
   0x6   : > { %p214_p4 = scmp.lt.s32.totalorder (!%p182_p3), %s459_s12, 0  ;;  %vm241_vm0 = vcmask (!%p182_p3), 113664   ;;  %v250_v0 = vlaneseq (!%p182_p3)  ;;  %s252_s16 = smul.u32 (!%p182_p3), 14, %s459_s12  ;;  %v469_v1 = vmov (!%p182_p3), 0.0   ;;  %v248_v8 = vld [vmem:[%s553_s2] sm:$0xff] (!%p182_p3) }
   0x7   : > { %185 = sbr.rel (%p182_p3) target bundleno = 264 (0x108), region = 32  ;;  %244 = vst.msk [vmem:[#allocation4] sm:$0xff] (!%p182_p3), %vm241_vm0, %v469_v1  ;;  %242 = vst.msk [vmem:[#allocation2] sm:$0xff] (!%p182_p3), %vm241_vm0, %v469_v1  ;;  %p233_p5 = scmp.lt.s32.totalorder (!%p182_p3), %s459_s12, 1 }
   0x8   : > { %243 = vst.msk [vmem:[#allocation3] sm:$0xff] (!%p182_p3), %vm241_vm0, %v469_v1  ;;  %v516_v2 = vand.u32 (!%p182_p3), 127, %v250_v0  ;;  %v253_v3 = vstv (!%p182_p3), %s252_s16 }
   0xa   : > { %v254_v4 = vadd.s32 (!%p182_p3), %v253_v3, %v516_v2  ;;  %vm313_vm3 = vcmp.eq.s32.totalorder (!%p182_p3), %v516_v2, 0  ;;  %vm316_vm4 = vcmp.eq.s32.totalorder (!%p182_p3), %v516_v2, 1  ;;  %vm319_vm5 = vcmp.eq.s32.totalorder (!%p182_p3), %v516_v2, 2 }
   0xc   : > { %vm255_vm1 = vcmp.lt.s32.totalorder (!%p182_p3), %v254_v4, 14 }
   0xe   : > { %s215_s17 = scalar_select %p214_p4, %s459_s12, 0  ;;  %v274_v11 = vld [vmem:[#allocation4] sm:$0xff]  ;;  %v264_v21 = vld [vmem:[#allocation2] sm:$0xff] }
   0xf   : > { %v270_v20 = vld [vmem:[#allocation3] sm:$0xff]  ;;  %s562_s12 = smov (!%p233_p5, %s459_s12), 1 }
  0x10   : > { %s560_s17 = smov (!%p214_p4, %s215_s17), 0  ;;  %s409_s29 = sshll.u32 %s562_s12, 3 }
  0x11   : > { %s408_s18 = sshll.u32 %s560_s17, 2  ;;  %s404_s19 = sshll.u32 %s560_s17, 3 }
  0x12   : > { %s229_s22 = scalar_lea.vmem %s552_s1, %s408_s18  ;;  %s219_s25 = scalar_lea.vmem %s551_s0, %s404_s19 }
  0x13   : > { %v246_v5 = vld [vmem:[%s229_s22] sm:$0xf]  ;;  %s236_s6 = scalar_lea.vmem %s554_s3, %s409_s29 }
  0x14   : > { %v245_v6 = vld [vmem:[%s219_s25] sm:$0xff]  ;;  %v247_v7 = vunpack.c.l.bf16 %v246_v5 }
  0x15   : > { %v258_v9 = vsub.f32 1.0, %v245_v6 }
  0x16   : > { %v256_v10 = vsel %vm255_vm1, %v247_v7, 0.0 }
  0x17   : > { %v259_v12 = vsel %vm255_vm1, %v258_v9, 1.0  ;;  %v263_v13 = vmul.f32 %v256_v10, %v248_v8  ;;  %vm257_vm2 = vcmp.gt.f32.partialorder %v256_v10, 0.0 }
  0x18   : > { %v260_v14 = vsel %vm257_vm2, %v245_v6, %v259_v12 }
  0x19   : > { %v275_v15 = vadd.f32 %v274_v11, %v263_v13  ;;  %443 = vlog2.f32 %v260_v14 }
  0x1b   : > { %276 = vst.msk [vmem:[#allocation4] sm:$0xff] %vm241_vm0, %v275_v15 }
  0x22   : > { %v302_v16 = vld [vmem:[#allocation4] sm:$0xff] }
  0x23   : > { %v444_v17 = vpop.eup %443  ;;  %v303_v18 = vsel %vm241_vm0, %v302_v16, 0.0 }
  0x24   : > { %304 = vadd.xlane.f32.xlu1 %v303_v18  ;;  %v262_v19 = vmul.f32 0.6931472, %v444_v17 }
  0x26   : > { %v265_v22 = vmul.f32 %v263_v13, %v262_v19  ;;  %v271_v23 = vsel %vm257_vm2, 0.0, %v262_v19 }
  0x27   : > { %v272_v24 = vadd.f32 %v271_v23, %v270_v20 }
  0x28   : > { %v266_v25 = vsel %vm257_vm2, %v265_v22, 0.0 }
  0x29   : > { %v267_v26 = vadd.f32 %v266_v25, %v264_v21  ;;  %273 = vst.msk [vmem:[#allocation3] sm:$0xff] %vm241_vm0, %v272_v24 }
  0x2b   : > { %269 = vst.msk [vmem:[#allocation2] sm:$0xff] %vm241_vm0, %v267_v26 }
  0x30   : > { %v291_v28 = vld [vmem:[#allocation3] sm:$0xff] }
  0x31   : > { %v292_v30 = vsel %vm241_vm0, %v291_v28, 0.0 }
  0x32   : > { %v280_v27 = vld [vmem:[#allocation2] sm:$0xff] }
  0x33   : > { %v281_v29 = vsel %vm241_vm0, %v280_v27, 0.0 }
  0x34   : > { %282 = vadd.xlane.f32.xlu0 %v281_v29 }
  0x38   : > { %293 = vadd.xlane.f32.xlu0 %v292_v30 }
  0xb1   : > { %v305_v31 = vpop.xlane.xlu1 %304 }
  0xb2   : > { %v306_v32 = vrot.slane %v305_v31, 4 }
  0xb4   : > { %v307_v33 = vadd.f32 %v306_v32, %v305_v31 }
  0xb6   : > { %v308_v37 = vrot.slane %v307_v33, 2 }
  0xb8   : > { %v309_v43 = vadd.f32 %v308_v37, %v307_v33 }
  0xba   : > { %v310_v48 = vrot.slane %v309_v43, 1 }
  0xbc   : > { %v311_v51 = vadd.f32 %v310_v48, %v309_v43 }
  0xc1   : > { %v283_v34 = vpop.xlane.xlu0 %282 }
  0xc2   : > { %v284_v35 = vrot.slane %v283_v34, 4 }
  0xc4   : > { %v285_v36 = vadd.f32 %v284_v35, %v283_v34 }
  0xc5   : > { %v294_v38 = vpop.xlane.xlu0 %293 }
  0xc6   : > { %v286_v39 = vrot.slane %v285_v36, 2  ;;  %v295_v40 = vrot.slane %v294_v38, 4 }
  0xc8   : > { %v296_v41 = vadd.f32 %v295_v40, %v294_v38  ;;  %v287_v42 = vadd.f32 %v286_v39, %v285_v36 }
  0xca   : > { %v297_v44 = vrot.slane %v296_v41, 2  ;;  %v288_v45 = vrot.slane %v287_v42, 1 }
  0xcc   : > { %v298_v46 = vadd.f32 %v297_v44, %v296_v41  ;;  %v289_v47 = vadd.f32 %v288_v45, %v287_v42 }
  0xce   : > { %412 = vpush %v289_v47  ;;  %v299_v49 = vrot.slane %v298_v46, 1 }
  0xd0   : > { %v300_v50 = vadd.f32 %v299_v49, %v298_v46 }
  0xd2   : > { %414 = vpush %v300_v50 }
  0xd3   : > { %416 = vpush %v311_v51 }
  0xff   : > { %s413_s28 = spop %412 }
 0x100   : > { %v314_v52 = vstv %s413_s28 }
 0x101   : > { %v315_v53 = vsel %vm313_vm3, %v314_v52, 0.0 }
 0x103   : > { %s415_s30 = spop %414 }
 0x104   : > { %v317_v54 = vstv %s415_s30  ;;  %s417_s7 = spop %416 }
 0x105   : > { %v318_v55 = vsel %vm316_vm4, %v317_v54, %v315_v53  ;;  %v320_v56 = vstv %s417_s7 }
 0x106   : > { %v321_v57 = vsel %vm319_vm5, %v320_v56, %v318_v55 }
 0x107   : > { %322 = vst [vmem:[%s236_s6] sm:$0xff] %v321_v57 }
 0x108 PF: > { %s13_s14 = sadd.s32 1, %s467_s14   ;;  %s555_s12 = smov %s463_s13 }
 0x109   : > { %p10_p6 = scmp.ge.s32.totalorder %s13_s14, 4   ;;  %s556_s13 = smov %s558_s15 }
 0x10b   :  { %12 = sbr.rel (!%p10_p6) target bundleno = 2 (0x2), region = 73 }

</bundles_post_ra>
